<compile_context>
chip_gen: v7x
topology: tpu7x:2x2x1
jax: 0.10.0
libtpu: 0.0.40
codegen_flags: <defaults>
</compile_context>

<pallas_src>
import functools

import jax
import jax.numpy as jnp
from jax.experimental import pallas as pl
from jax.experimental.pallas import tpu as pltpu


# ----------------------------- kernel ---------------------------------------


def embedding_kernel(patches_ref, w_ref, cls_row_ref, pos_body_ref, out_ref, *,
                     bm, n_patches):
    # One MXU matmul per grid step: (bm*N, K) @ (K, D), bf16 in, f32 accumulate.
    proj = jnp.dot(patches_ref[...], w_ref[...],
                   preferred_element_type=jnp.float32)            # (bm*N, D) f32
    d = proj.shape[-1]

    # Patch tokens: add (pos_emb[1:] + conv_bias), precomputed in the wrapper.
    # N is a multiple of 8 here so the reshape is layout-free.
    body = proj.reshape(bm, n_patches, d) + pos_body_ref[...][None, :, :]
    out_ref[:, 1:, :] = body.astype(out_ref.dtype)

    # cls token row: (cls_token + pos_emb[0]), broadcast over batch.
    cls_row = cls_row_ref[...]                                     # (1, D) f32
    out_ref[:, 0:1, :] = jnp.broadcast_to(
        cls_row[None, :, :], (bm, 1, d)).astype(out_ref.dtype)
    # Dropout(drop_ratio=0.0) is the identity -> nothing to do.


# ----------------------------- wrapper ---------------------------------------


def _choose_bm(B, N, K, S, D):
    """Pick a per-step batch tile so double-buffered tiles stay well under the
    scoped VMEM limit on all gens (v7x: 64 MiB physical / 32 MiB default scoped,
    v5e: 16 MiB default scoped)."""
    per_b = 2 * (N * K * 2 + S * D * 4)          # 2x for double-buffering
    bm = max(1, min(B, (8 << 20) // max(per_b, 1)))
    if B >= 2:
        bm = max(1, min(bm, B // 2))             # >=2 grid steps -> both v7x TCs busy
    while B % bm:
        bm -= 1
    return bm


def embedding(x, conv_w, conv_b, cls_token, pos_emb, *, patch_size, bm=None):
    """x: (B, C, H, W), conv_w: (D, C, ps, ps). Returns (B, num_patches+1, D)."""
    B, C, H, W = x.shape
    ps = patch_size
    Hp, Wp = H // ps, W // ps
    N = Hp * Wp
    D = conv_w.shape[0]
    K = C * ps * ps
    S = N + 1

    # --- layout plumbing (outside the kernel) ---
    # im2col for a stride==kernel conv:
    #   (B, C, Hp, ps, Wp, ps) -> (B, Hp, Wp, C, ps, ps) -> (B*N, C*ps*ps)
    # TODO(synk): at production scale this transpose is a full extra HBM
    # read+write of the activations; prefer NHWC input or verify the HLO fuses
    # it into the producer.
    patches = (x.reshape(B, C, Hp, ps, Wp, ps)
                .transpose(0, 2, 4, 1, 3, 5)
                .reshape(B * N, K))
    w2d = conv_w.reshape(D, K).T                 # (K, D): matches (c, ph, pw) order

    # MXU operands in bf16 (f32 accumulation inside the kernel); elementwise f32.
    patches_bf = patches.astype(jnp.bfloat16)
    w_bf = w2d.astype(jnp.bfloat16)

    pos2d = pos_emb.reshape(S, D).astype(jnp.float32)
    # Fold the conv bias into the patch-token positional rows (one fewer VPU
    # pass per step); cls row gets cls_token + pos[0].
    pos_body = pos2d[1:, :] + conv_b.reshape(1, D).astype(jnp.float32)   # (N, D)
    cls_row = cls_token.reshape(1, D).astype(jnp.float32) + pos2d[0:1, :]  # (1, D)

    if bm is None:
        bm = _choose_bm(B, N, K, S, D)
    grid = (B // bm,)

    kernel = functools.partial(embedding_kernel, bm=bm, n_patches=N)

    cost = pl.CostEstimate(
        flops=2 * (B * N) * K * D + 2 * B * S * D,
        transcendentals=0,
        bytes_accessed=(2 * (B * N * K + K * D)          # bf16 patches + weight
                        + 4 * (S * D + B * S * D)),      # f32 pos/cls + output
    )

    return pl.pallas_call(
        kernel,
        out_shape=jax.ShapeDtypeStruct((B, S, D), x.dtype),
        grid_spec=pltpu.PrefetchScalarGridSpec(
            num_scalar_prefetch=0,
            grid=grid,
            in_specs=[
                pl.BlockSpec((bm * N, K), lambda i: (i, 0)),   # patches (tiled over M)
                pl.BlockSpec((K, D), lambda i: (0, 0)),        # conv weight (pinned)
                pl.BlockSpec((1, D), lambda i: (0, 0)),        # cls + pos[0] (pinned)
                pl.BlockSpec((N, D), lambda i: (0, 0)),        # pos[1:] + bias (pinned)
            ],
            out_specs=pl.BlockSpec((bm, S, D), lambda i: (i, 0, 0)),
        ),
        compiler_params=pltpu.CompilerParams(
            dimension_semantics=("parallel",)),
        cost_estimate=cost,
    )(patches_bf, w_bf, cls_row, pos_body)


# ----------------------------- reference (pure JAX) ---------------------------


def embedding_ref(x, conv_w, conv_b, cls_token, pos_emb, *, patch_size):
    ps = patch_size
    out = jax.lax.conv_general_dilated(
        x, conv_w, window_strides=(ps, ps), padding="VALID",
        dimension_numbers=("NCHW", "OIHW", "NCHW"))
    out = out + conv_b[None, :, None, None]
    B, D, Hp, Wp = out.shape
    out = out.reshape(B, D, Hp * Wp).transpose(0, 2, 1)    # 'B C H W -> B (H W) C'
    cls = jnp.broadcast_to(cls_token, (B, 1, D))
    out = jnp.concatenate([cls, out], axis=1)
    return out + pos_emb                                   # Dropout(p=0) = identity


# ----------------------------- main -------------------------------------------


if __name__ == "__main__":
    # Small shapes consistent with the module: 16x16 image, 8 channels,
    # patch_size=4 -> 16 patches (seq=17), dim=128 (lane-dense), K=8*4*4=128.
    B, C, IMG, PS, D = 2, 8, 16, 4, 128
    N = (IMG // PS) ** 2
    S = N + 1

    key = jax.random.PRNGKey(0)
    k = jax.random.split(key, 5)
    x = jax.random.normal(k[0], (B, C, IMG, IMG), jnp.float32)
    conv_w = 0.05 * jax.random.normal(k[1], (D, C, PS, PS), jnp.float32)
    conv_b = 0.01 * jax.random.normal(k[2], (D,), jnp.float32)
    # The module initializes these to zeros; random values make the test meaningful.
    cls_token = 0.02 * jax.random.normal(k[3], (1, 1, D), jnp.float32)
    pos_emb = 0.02 * jax.random.normal(k[4], (1, S, D), jnp.float32)

    out = embedding(x, conv_w, conv_b, cls_token, pos_emb, patch_size=PS)
    out = jax.block_until_ready(out)

    ref = embedding_ref(x, conv_w, conv_b, cls_token, pos_emb, patch_size=PS)
    assert out.shape == (B, S, D)
    # bf16 MXU operands with f32 accumulation -> loosened tolerance.
    assert jnp.allclose(out, ref, atol=3e-2, rtol=1e-2), "mismatch vs JAX reference"

    print("KERNEL_OK")
</pallas_src>

<mosaic_0001>
module attributes {stable_mosaic.version = 11 : i64} {
  func.func @embedding_kernel(%arg0: i32, %arg1: memref<16x128xbf16, #tpu.memory_space<vmem>>, %arg2: memref<128x128xbf16, #tpu.memory_space<vmem>>, %arg3: memref<1x128xf32, #tpu.memory_space<vmem>>, %arg4: memref<16x128xf32, #tpu.memory_space<vmem>>, %arg5: memref<1x17x128xf32, #tpu.memory_space<vmem>>) attributes {dimension_semantics = [#tpu.dimension_semantics<parallel>], iteration_bounds = array<i64: 2>, scalar_prefetch = 0 : i64, scratch_operands = 0 : i64, tpu.core_type = #tpu.core_type<tc>, window_params = [{transform_indices = @transform_0, window_bounds = array<i64: 16, 128>}, {pipeline_mode = #tpu.pipeline_mode<synchronous>, transform_indices = @transform_1, window_bounds = array<i64: 128, 128>}, {pipeline_mode = #tpu.pipeline_mode<synchronous>, transform_indices = @transform_2, window_bounds = array<i64: 1, 128>}, {pipeline_mode = #tpu.pipeline_mode<synchronous>, transform_indices = @transform_3, window_bounds = array<i64: 16, 128>}, {transform_indices = @transform_4, window_bounds = array<i64: 1, 17, 128>}]} {
    %c0 = arith.constant 0 : index
    %c0_0 = arith.constant 0 : index
    %0 = vector.load %arg1[%c0, %c0_0] : memref<16x128xbf16, #tpu.memory_space<vmem>>, vector<16x128xbf16>
    %c0_1 = arith.constant 0 : index
    %c0_2 = arith.constant 0 : index
    %1 = vector.load %arg2[%c0_1, %c0_2] : memref<128x128xbf16, #tpu.memory_space<vmem>>, vector<128x128xbf16>
    %cst = arith.constant dense<0.000000e+00> : vector<16x128xf32>
    %2 = tpu.matmul %0, %1, %cst {dimension_numbers = #tpu.dot_dimension_numbers<[1], [0], [0], [1], [0, 0, 1, 1], [], []>} : vector<16x128xbf16>, vector<128x128xbf16>, vector<16x128xf32> -> vector<16x128xf32>
    %3 = vector.shape_cast %2 : vector<16x128xf32> to vector<1x16x128xf32>
    %c0_3 = arith.constant 0 : index
    %c0_4 = arith.constant 0 : index
    %4 = vector.load %arg4[%c0_3, %c0_4] : memref<16x128xf32, #tpu.memory_space<vmem>>, vector<16x128xf32>
    %5 = vector.shape_cast %4 : vector<16x128xf32> to vector<1x16x128xf32>
    %6 = arith.addf %3, %5 : vector<1x16x128xf32>
    %c0_5 = arith.constant 0 : index
    %c1 = arith.constant 1 : index
    %c0_6 = arith.constant 0 : index
    %7 = vector.load %arg5[%c0_5, %c1, %c0_6] : memref<1x17x128xf32, #tpu.memory_space<vmem>>, vector<1x16x128xf32>
    tpu.vector_store %arg5[%c0_5, %c1, %c0_6], %6 {strides = array<i32>} : memref<1x17x128xf32, #tpu.memory_space<vmem>>, vector<1x16x128xf32>,
    %c0_7 = arith.constant 0 : index
    %c0_8 = arith.constant 0 : index
    %8 = vector.load %arg3[%c0_7, %c0_8] : memref<1x128xf32, #tpu.memory_space<vmem>>, vector<1x128xf32>
    %9 = vector.shape_cast %8 : vector<1x128xf32> to vector<1x1x128xf32>
    %c0_9 = arith.constant 0 : index
    %c0_10 = arith.constant 0 : index
    %c0_11 = arith.constant 0 : index
    %10 = vector.load %arg5[%c0_9, %c0_10, %c0_11] : memref<1x17x128xf32, #tpu.memory_space<vmem>>, vector<1x1x128xf32>
    tpu.vector_store %arg5[%c0_9, %c0_10, %c0_11], %9 {strides = array<i32>} : memref<1x17x128xf32, #tpu.memory_space<vmem>>, vector<1x1x128xf32>,
    return
  }
  func.func @transform_0(%arg0: i32) -> (i32, i32) {
    %c0_i32 = arith.constant 0 : i32
    %c0_i32_0 = arith.constant 0 : i32
    return %arg0, %c0_i32 : i32, i32
  }
  func.func @transform_1(%arg0: i32) -> (i32, i32) {
    %c0_i32 = arith.constant 0 : i32
    %c0_i32_0 = arith.constant 0 : i32
    %c0_i32_1 = arith.constant 0 : i32
    return %c0_i32, %c0_i32_0 : i32, i32
  }
  func.func @transform_2(%arg0: i32) -> (i32, i32) {
    %c0_i32 = arith.constant 0 : i32
    %c0_i32_0 = arith.constant 0 : i32
    %c0_i32_1 = arith.constant 0 : i32
    return %c0_i32, %c0_i32_0 : i32, i32
  }
  func.func @transform_3(%arg0: i32) -> (i32, i32) {
    %c0_i32 = arith.constant 0 : i32
    %c0_i32_0 = arith.constant 0 : i32
    %c0_i32_1 = arith.constant 0 : i32
    return %c0_i32, %c0_i32_0 : i32, i32
  }
  func.func @transform_4(%arg0: i32) -> (i32, i32, i32) {
    %c0_i32 = arith.constant 0 : i32
    %c0_i32_0 = arith.constant 0 : i32
    %c0_i32_1 = arith.constant 0 : i32
    return %arg0, %c0_i32, %c0_i32_0 : i32, i32, i32
  }
}

</mosaic_0001>

<bundles_post_ra>
// kernel: tpu_custom_call.1
= control target key start
LH: loop header
LB: loop body
LE: loop exit
PB: predicated region body
PF: predicated region fallthrough
CT: control target
= control target key end

     0   :  { %9 = vsyncpa [#allocation3], 0  ;;  %s935_s0 = inlined_call_operand.hbm [shape: bf16[32,128], index: 0, kind: input, shape index: {}]   ;;  %s936_s1 = inlined_call_operand.hbm [shape: bf16[128,128], index: 1, kind: input, shape index: {}]   ;;  %s937_s2 = inlined_call_operand.vmem [shape: f32[1,128], index: 2, kind: input, shape index: {}]   ;;  %s938_s3 = inlined_call_operand.hbm [shape: f32[16,128], index: 3, kind: input, shape index: {}]   ;;  %s939_s4 = inlined_call_operand.vmem [shape: f32[2,17,128], index: 4, kind: output, shape index: {}]  }
   0x1   :  { %11 = vsyncpa [#allocation3 + $0x1], 0 }
   0x2   :  { %12 = vsyncpa [#allocation5], 0  ;;  %s746_s15 = smov 0   ;;  %s748_s16 = smov 0  }
   0x3   :  { %s750_s17 = smov 0   ;;  %s752_s18 = smov 0  }
   0x4 LB: > { %s765_s19 = sadd.s32 4294967295, %s710_s18   ;;  %p38_p0 = scmp.ne.s32.totalorder %s702_s16, %s698_s15  ;;  %s710_s18 = sphi %s752_s18, %s954_s18   ;;  %s706_s17 = sphi %s750_s17, %s953_s17   ;;  %s702_s16 = sphi %s748_s16, %s952_s16   ;;  %s698_s15 = sphi %s746_s15, %s951_s15  }
   0x5   : > { %p940_p1 = scmp.eq.s32.totalorder %s765_s19, 0  ;;  %p457_p2 = scmp.ge.s32.totalorder %s710_s18, 1 }
   0x6   : > { %p138_p3 = scmp.lt.s32.totalorder %s710_s18, 3  ;;  %s712_s22 = smov [#allocation4]  }
   0x7   : > { %p773_p4 = por %p940_p1, %p38_p0  ;;  %s150_s23 = sshll.u32 %s712_s22, 4  ;;  %s151_s23 = int_to_ptr.vmem [resolvable:$true] %s150_s23 }
   0x8   : > { %p777_p5 = pnand %p457_p2, %p138_p3  ;;  %s713_s25 = smov [#allocation6]  }
   0x9   : > { %s943_s20 = scalar_select %p773_p4, 1, 0 }
   0xa   : > { %s944_s21 = scalar_select %p777_p5, 1, 0 }
   0xb   : > { %p521_p6 = pneg %p777_p5  ;;  %s166_s26 = sshll.u32 %s713_s25, 4  ;;  %s789_s26 = int_to_ptr.vmem [resolvable:$true] %s166_s26 }
   0xc   : > { %s586_s29 = scalar_lea.hbm %s936_s1, 1024 }
   0xd   : > { %p785_p7 = pnand %p521_p6, %p940_p1  ;;  %p587_p8 = scmp.ne.s32.totalorder %s936_s1, %s586_s29 }
   0xe   : > { %p593_p12 = scmp.lt.u32.totalorder %s586_s29, %s936_s1 }
   0xf   : > { %p588_p9 = pneg %p785_p7 }
  0x11   : > { %p589_p10 = pnand %p588_p9, %p587_p8 }
  0x13   : > { %p590_p11 = pneg %p589_p10 }
  0x15   : > { %p595_p13 = pnand %p593_p12, %p590_p11 }
  0x17   : > { %598 = shalt.err (!%p595_p13)
}
  0x18   : > { %s599_s8 = scalar_lea.vmem %s151_s23, 1024  ;;  %p607_p6 = scmp.lt.s32.totalorder %s151_s23, %s151_s23 }
  0x19   : > { %p600_p0 = scmp.ne.s32.totalorder %s151_s23, %s599_s8  ;;  %p608_p1 = scmp.lt.s32.totalorder %s599_s8, %s599_s8 }
  0x1b   : > { %p602_p2 = pnand %p600_p0, %p588_p9  ;;  %p609_p4 = por %p608_p1, %p607_p6 }
  0x1d   : > { %p603_p3 = pneg %p602_p2 }
  0x1f   : > { %p610_p5 = pnand %p609_p4, %p603_p3 }
  0x21   : > { %613 = shalt.err (!%p610_p5)
}
  0x22   : > { %s714_s9 = smov 64   ;;  %s715_s10 = smov 4  }
  0x23   : > { %524 = dma.hbm_to_vmem [thread:$0]  (!%p785_p7), %s936_s1, 1024, %s151_s23, [#allocation5], %s714_s9, %s714_s9, %s715_s10  }
  0x24   : > { %s614_s15 = scalar_lea.hbm %s938_s3, 256 }
  0x25   : > { %p615_p1 = scmp.ne.s32.totalorder %s938_s3, %s614_s15  ;;  %p621_p8 = scmp.lt.u32.totalorder %s614_s15, %s938_s3 }
  0x27   : > { %p617_p4 = pnand %p615_p1, %p588_p9 }
  0x29   : > { %p618_p5 = pneg %p617_p4 }
  0x2b   : > { %p623_p10 = pnand %p621_p8, %p618_p5 }
  0x2d   : > { %626 = shalt.err (!%p623_p10)
}
  0x2e   : > { %s627_s23 = scalar_lea.vmem %s789_s26, 256  ;;  %p635_p0 = scmp.lt.s32.totalorder %s789_s26, %s789_s26 }
  0x2f   : > { %p628_p11 = scmp.ne.s32.totalorder %s789_s26, %s627_s23  ;;  %p636_p2 = scmp.lt.s32.totalorder %s627_s23, %s627_s23 }
  0x31   : > { %p630_p12 = pnand %p628_p11, %p588_p9  ;;  %p637_p3 = por %p636_p2, %p635_p0 }
  0x33   : > { %p631_p13 = pneg %p630_p12 }
  0x35   : > { %p638_p6 = pnand %p637_p3, %p631_p13 }
  0x37   : > { %641 = shalt.err (!%p638_p6)
}
  0x38   : > { %s716_s29 = smov 128   ;;  %s717_s30 = smov 8  }
  0x39   : > { %527 = dma.hbm_to_vmem [thread:$0]  (!%p785_p7), %s938_s3, 256, %s789_s26, [#allocation5], %s716_s29, %s716_s29, %s717_s30  }
  0x3a   : > { %s842_s7 = sadd.s32 1, %s710_s18   ;;  %s25_s11 = sadd.s32 1, %s706_s17 }
  0x3b   : > { %s22_s8 = ssub.s32 %s710_s18, %s842_s7  ;;  %p32_p1 = scmp.ne.s32.totalorder %s706_s17, %s702_s16 }
  0x3c   : > { %p23_p9 = scmp.eq.s32.totalorder %s22_s8, 0  ;;  %p33_p4 = scmp.eq.s32.totalorder %s710_s18, 0 }
  0x3d   : > { %p534_p8 = scmp.lt.s32.totalorder %s710_s18, 2  ;;  %s180_s13 = sand.u32 1, %s706_s17  }
  0x3e   : > { %s851_s12 = scalar_select %p23_p9, %s706_s17, %s25_s11  }
  0x3f   : > { %p34_p5 = por %p33_p4, %p32_p1  ;;  %s480_s14 = sshll.u32 %s710_s18, 7 }
  0x40   : > { %s461_s15 = sshll.u32 %s180_s13, 3  ;;  %s859_s25 = scalar_lea.hbm %s935_s0, %s480_s14 }
  0x41   : > { %s184_s26 = scalar_lea.vmem [#allocation2], %s461_s15  ;;  %p861_p7 = pnand %p534_p8, %p34_p5 }
  0x42   : > { %s191_s27 = sshll.u32 %s184_s26, 4  ;;  %s867_s18 = scalar_lea.sflag [#allocation3], %s180_s13  ;;  %s865_s27 = int_to_ptr.vmem [resolvable:$true] %s191_s27 }
  0x43   : > { %s642_s23 = scalar_lea.hbm %s859_s25, 128  ;;  %p644_p11 = pneg %p861_p7 }
  0x44   : > { %p643_p10 = scmp.ne.s32.totalorder %s859_s25, %s642_s23  ;;  %s647_s5 = scalar_lea.hbm %s935_s0, 256 }
  0x45   : > { %p648_p0 = scmp.lt.u32.totalorder %s859_s25, %s935_s0  ;;  %p649_p2 = scmp.lt.u32.totalorder %s647_s5, %s642_s23 }
  0x46   : > { %p645_p12 = pnand %p644_p11, %p643_p10  ;;  %p651_p6 = scmp.lt.u32.totalorder %s642_s23, %s859_s25 }
  0x47   : > { %p650_p3 = por %p649_p2, %p648_p0 }
  0x48   : > { %p646_p13 = pneg %p645_p12 }
  0x49   : > { %p652_p9 = por %p651_p6, %p650_p3 }
  0x4b   : > { %p653_p1 = pnand %p652_p9, %p646_p13 }
  0x4d   : > { %656 = shalt.err (!%p653_p1)
}
  0x4e   : > { %s657_s11 = scalar_lea.vmem %s865_s27, 128  ;;  %s718_s13 = smov [#allocation2]  }
  0x4f   : > { %p658_p4 = scmp.ne.s32.totalorder %s865_s27, %s657_s11  ;;  %s662_s14 = sshll.u32 %s718_s13, 4  ;;  %s663_s14 = int_to_ptr.vmem [resolvable:$false] %s662_s14 }
  0x50   : > { %s664_s15 = scalar_lea.vmem %s663_s14, 256  ;;  %p665_p10 = scmp.lt.s32.totalorder %s865_s27, %s663_s14 }
  0x51   : > { %p660_p5 = pnand %p658_p4, %p644_p11  ;;  %p666_p12 = scmp.lt.s32.totalorder %s664_s15, %s657_s11 }
  0x53   : > { %p661_p8 = pneg %p660_p5  ;;  %p667_p0 = por %p666_p12, %p665_p10 }
  0x55   : > { %p668_p2 = pnand %p667_p0, %p661_p8 }
  0x57   : > { %671 = shalt.err (!%p668_p2)
}
  0x58   : > { %531 = dma.hbm_to_vmem [thread:$0]  (!%p861_p7), %s859_s25, 128, %s865_s27, %s867_s18, %s714_s9, %s714_s9, %s715_s10  }
  0x59   : > { %p947_p11 = scmp.ne.s32.totalorder %s944_s21, 0 }
  0x5a   : > { %s205_s24 = sand.u32 (!%p947_p11), 1, %s702_s16   ;;  %p948_p13 = scmp.ne.s32.totalorder (!%p947_p11), %s943_s20, 0 }
  0x5b   : > { %203 = sbr.rel (%p947_p11) target bundleno = 352 (0x160), region = 36  ;;  %s901_s22 = sshll.u32 (!%p947_p11), %s205_s24, 3 }
  0x5c   : > { %s206_s26 = scalar_lea.sflag (!%p947_p11), [#allocation3], %s205_s24  ;;  %s209_s23 = scalar_lea.vmem (!%p947_p11), [#allocation2], %s901_s22 }
  0x62   : > { %689 = dma.done.wait (%p948_p13), %s206_s26, 128  }
  0x63   : > { %691 = vsyncadd (%p948_p13), %s206_s26, 4294967168  ;;  %p949_p3 = scmp.eq.s32.totalorder %s765_s19, 0 }
  0x65   : > { %693 = dma.done.wait (%p949_p3), [#allocation5], 1280   ;;  %p950_p7 = pmov %p949_p3 }
  0x66   : > { %v719_v0 = vmov 0.0   ;;  %vm720_vm0 = vmmov 0   ;;  %v577_v1 = vld [vmem:[#allocation4] sm:$0xff]   ;;  %v578_v2 = vld [vmem:[#allocation4 + $0x8] sm:$0xff]   ;;  %v579_v3 = vld [vmem:[#allocation4 + $0x10] sm:$0xff]   ;;  %p243_p6 = scmp.lt.s32.totalorder %s765_s19, 1 }
  0x67   : > { %695 = vsyncadd (%p950_p7), [#allocation5], 4294966016  ;;  %490 = vmatprep.subr.bf16.mxu0 %v719_v0  ;;  %506 = vmatprep.mubr.msk.bf16.mxu0 %vm720_vm0, %v719_v0  ;;  %v580_v4 = vld [vmem:[#allocation4 + $0x18] sm:$0xff]   ;;  %v581_v5 = vld [vmem:[#allocation4 + $0x20] sm:$0xff]  }
  0x68   : > { %491 = vmatpush3.bf16.msra.mxu0 %v577_v1  ;;  %v582_v6 = vld [vmem:[#allocation4 + $0x28] sm:$0xff]   ;;  %v583_v7 = vld [vmem:[#allocation4 + $0x30] sm:$0xff]   ;;  %v584_v8 = vld [vmem:[#allocation4 + $0x38] sm:$0xff]   ;;  %s956_s19 = smov (!%p243_p6, %s765_s19), 1 }
  0x69   : > { %492 = vmatprep.subr.bf16.mxu0 %v719_v0  ;;  %v585_v9 = vld [vmem:[%s209_s23] sm:$0xff]   ;;  %s510_s20 = smul.u32 24, %s956_s19  ;;  %v368_v10 = vld [vmem:[%s937_s2] sm:$0x1]  ;;  %v363_v13 = vld [vmem:[#allocation6 + $0x8] sm:$0xff] }
  0x6a   : > { %v362_v11 = vld [vmem:[#allocation6] sm:$0xff] }
  0x6b   : > { %s247_s10 = scalar_lea.vmem %s939_s4, %s510_s20 }
  0x6c   : > { %493 = vmatpush3.bf16.msra.mxu0 %v578_v2  ;;  %369 = vst [vmem:[%s247_s10] sm:$0x1] %v368_v10 }
  0x6d   : > { %494 = vmatprep.subr.bf16.mxu0 %v719_v0 }
  0x70   : > { %495 = vmatpush3.bf16.msra.mxu0 %v579_v3 }
  0x71   : > { %496 = vmatprep.subr.bf16.mxu0 %v719_v0 }
  0x74   : > { %497 = vmatpush3.bf16.msra.mxu0 %v580_v4 }
  0x75   : > { %498 = vmatprep.subr.bf16.mxu0 %v719_v0 }
  0x78   : > { %499 = vmatpush3.bf16.msra.mxu0 %v581_v5 }
  0x79   : > { %500 = vmatprep.subr.bf16.mxu0 %v719_v0 }
  0x7c   : > { %501 = vmatpush3.bf16.msra.mxu0 %v582_v6 }
  0x7d   : > { %502 = vmatprep.subr.bf16.mxu0 %v719_v0 }
  0x80   : > { %503 = vmatpush3.bf16.msra.mxu0 %v583_v7 }
  0x81   : > { %504 = vmatprep.subr.bf16.mxu0 %v719_v0 }
  0x84   : > { %505 = vmatpush3.bf16.msra.mxu0 %v584_v8 }
  0x87   : > { %507 = vmatmul.mubr.bf16.vlgmr.msra.gmra.mrb[0].mxu0 %v585_v9 }
 0x15a   : > { %v355_v12 = vpop.f32.mrb[0].mxu0 }
 0x15b   : > { %v364_v14 = vadd.f32 %v362_v11, %v355_v12  ;;  %v508_v15 = vpop.f32.mrb[1].mxu0 }
 0x15c   : > { %v358_v16 = vpop.f32.mrb[2].mxu0 }
 0x15d   : > { %366 = vst [vmem:[%s247_s10 + $0x1] sm:$0xff] %v364_v14  ;;  %v365_v17 = vadd.f32 %v363_v13, %v358_v16  ;;  %v509_v18 = vpop.f32.mrb[3].mxu0 }
 0x15f   : > { %367 = vst [vmem:[%s247_s10 + $0x9] sm:$0xff] %v365_v17 }
 0x160 PF: > { %p15_p9 = scmp.ge.s32.totalorder %s842_s7, 4   ;;  %s951_s15 = smov %s702_s16 }
 0x161   : > { %s952_s16 = smov %s706_s17  ;;  %s953_s17 = smov %s851_s12 }
 0x162   : > { %s954_s18 = smov %s842_s7  ;;  %17 = sbr.rel (!%p15_p9) target bundleno = 4 (0x4), region = 84 }
 0x169   :  { %391 = vsyncpa [#allocation3], 1 }
 0x16a   :  { %393 = vsyncpa [#allocation3 + $0x1], 1 }
 0x16b   :  { %394 = vsyncpa [#allocation5], 1 }

</bundles_post_ra>
